<compile_context>
chip_gen: v7x
topology: tpu7x:2x2x1
jax: 0.10.0
libtpu: 0.0.40
codegen_flags: <defaults>
</compile_context>

<pallas_src>
import jax
import jax.numpy as jnp
from jax.experimental import pallas as pl
from jax.experimental.pallas import tpu as pltpu


def _round_up(x, m):
    return ((x + m - 1) // m) * m


def _choose_tile_rows(S, E_pad, itemsize, *, budget_bytes=8 * 1024 * 1024, max_rows=1024):
    """Largest multiple-of-8 row tile whose double-buffered x copy fits `budget_bytes`."""
    row_bytes = max(1, E_pad * itemsize)
    ts = (budget_bytes // (2 * row_bytes)) // 8 * 8
    ts = max(8, min(max_rows, ts))
    ts = min(ts, _round_up(S, 8))
    return int(ts)


def _make_attention_pooling_kernel(has_mask):
    """Kernel over grid (core_split, s_tiles). Refs:
       x (TS, Ep), v (Ep, 1), c (1,1) SMEM, [mask (TS,1)], out (1,1,Ep), acc (1,Ep)."""

    def kernel(*refs):
        if has_mask:
            x_ref, v_ref, c_ref, mask_ref, out_ref, acc_ref = refs
        else:
            x_ref, v_ref, c_ref, out_ref, acc_ref = refs
            mask_ref = None

        @pl.when(pl.program_id(1) == 0)
        def _init():
            acc_ref[...] = jnp.zeros_like(acc_ref)

        x = x_ref[...]                                                   # (TS, Ep), native dtype
        # Attention logits with u already folded into v = W @ u, c = b @ u:
        #   at = x @ v + c        (TS, 1), f32 accumulation on the MXU.
        at = jnp.dot(x, v_ref[...], preferred_element_type=jnp.float32)
        at = at + c_ref[0, 0]
        if has_mask:
            at = at * mask_ref[...].astype(jnp.float32)

        # Weighted sum of this tile's rows; axis=0 is the cheap sublane direction.
        acc_ref[...] += jnp.sum(at * x.astype(jnp.float32), axis=0, keepdims=True)

        @pl.when(pl.program_id(1) == pl.num_programs(1) - 1)
        def _flush():
            out_ref[0] = acc_ref[...].astype(out_ref.dtype)

    return kernel


def attention_pooling(feature, W, b, u, mask=None, *, tile_rows=None):
    """Pallas implementation of AttentionPooling.forward for 2-D `feature`.

    feature: (S, E); W: (E, A); b: (A,); u: (A, 1); mask: optional (S,)
    returns: (E,) in feature.dtype
    """
    S, E = feature.shape
    f32 = jnp.float32

    # ---- Fold the u-projection into the weights (done once, outside the kernel).
    v = jnp.dot(W.astype(f32), u.astype(f32),
                precision=jax.lax.Precision.HIGHEST)                       # (E, 1)
    c = jnp.dot(b.astype(f32).reshape(1, -1), u.astype(f32),
                precision=jax.lax.Precision.HIGHEST).reshape(1, 1)         # (1, 1)

    # ---- Lane-dense E padding and S tiling.
    E_pad = _round_up(E, 128)
    itemsize = jnp.dtype(feature.dtype).itemsize
    if tile_rows is not None:
        ts = max(8, (int(tile_rows) // 8) * 8)
        ts = min(ts, _round_up(S, 8))
    else:
        ts = _choose_tile_rows(S, E_pad, itemsize)

    num_tiles = -(-S // ts)
    num_cores = 2 if num_tiles >= 2 else 1       # split the reduction across 2 TCs (v7x)
    tiles_per_core = -(-num_tiles // num_cores)
    S_pad = num_cores * tiles_per_core * ts

    # Zero-padded rows/cols contribute exactly 0 to the output (at * 0 == 0).
    x_p = feature
    if E_pad != E or S_pad != S:
        x_p = jnp.pad(x_p, ((0, S_pad - S), (0, E_pad - E)))
    v_p = v
    if E_pad != E:
        v_p = jnp.pad(v_p, ((0, E_pad - E), (0, 0)))
    v_p = v_p.astype(feature.dtype)              # keep native dtype in VMEM (bf16 stays bf16)

    has_mask = mask is not None
    inputs = [x_p, v_p, c]
    in_specs = [
        pl.BlockSpec((ts, E_pad), lambda cc, s: (cc * tiles_per_core + s, 0)),  # x tile
        pl.BlockSpec((E_pad, 1), lambda cc, s: (0, 0)),                         # v (resident)
        pl.BlockSpec(memory_space=pltpu.MemorySpace.SMEM),                      # c scalar
    ]
    if has_mask:
        m_p = mask.astype(f32).reshape(S, 1)
        if S_pad != S:
            m_p = jnp.pad(m_p, ((0, S_pad - S), (0, 0)))
        inputs.append(m_p)
        in_specs.append(pl.BlockSpec((ts, 1), lambda cc, s: (cc * tiles_per_core + s, 0)))

    partials = pl.pallas_call(
        _make_attention_pooling_kernel(has_mask),
        out_shape=jax.ShapeDtypeStruct((num_cores, 1, E_pad), f32),
        grid_spec=pltpu.PrefetchScalarGridSpec(
            num_scalar_prefetch=0,
            grid=(num_cores, tiles_per_core),
            in_specs=in_specs,
            out_specs=pl.BlockSpec((1, 1, E_pad), lambda cc, s: (cc, 0, 0)),
            scratch_shapes=[pltpu.VMEM((1, E_pad), f32)],
        ),
        compiler_params=pltpu.CompilerParams(
            dimension_semantics=("parallel", "arbitrary"),
            vmem_limit_bytes=32 * 1024 * 1024,
        ),
    )(*inputs)

    out = jnp.sum(partials, axis=0)[0, :E]       # combine per-core partials, drop E padding
    return out.astype(feature.dtype)


def _reference(feature, W, b, u, mask=None):
    et = feature @ W + b
    at = (et @ u)[:, 0]
    if mask is not None:
        at = at * mask.astype(jnp.float32)
    return jnp.sum(at[:, None] * feature, axis=0)


if __name__ == "__main__":
    # Small shapes consistent with the module: seq=8, embed_dim=32, attention_dim=16.
    S, E, A = 8, 32, 16
    key = jax.random.PRNGKey(0)
    k_x, k_w, k_b, k_u, k_m = jax.random.split(key, 5)

    W = jax.random.uniform(k_w, (E, A), dtype=jnp.float32)
    b = jax.random.uniform(k_b, (A,), dtype=jnp.float32)
    u = jax.random.uniform(k_u, (A, 1), dtype=jnp.float32)

    x = jax.random.uniform(k_x, (S, E), dtype=jnp.float32)
    mask = (jax.random.uniform(k_m, (S,)) > 0.3).astype(jnp.float32)

    # Masked path.
    out = jax.block_until_ready(attention_pooling(x, W, b, u, mask=mask))
    ref = _reference(x, W, b, u, mask=mask)
    assert out.shape == (E,)
    assert jnp.allclose(out, ref, rtol=1e-4, atol=1e-4), (out, ref)

    # mask=None path (no mask stream DMA'd).
    out_nm = jax.block_until_ready(attention_pooling(x, W, b, u))
    ref_nm = _reference(x, W, b, u)
    assert jnp.allclose(out_nm, ref_nm, rtol=1e-4, atol=1e-4), (out_nm, ref_nm)

    # Multi-tile / padded / 2-way-split path at small shapes (forces tile_rows=8).
    k_x2, k_m2 = jax.random.split(jax.random.PRNGKey(1), 2)
    S2 = 20  # not a multiple of the tile -> exercises zero-padding + accumulator
    x2 = jax.random.uniform(k_x2, (S2, E), dtype=jnp.float32)
    mask2 = (jax.random.uniform(k_m2, (S2,)) > 0.3).astype(jnp.float32)
    out2 = jax.block_until_ready(attention_pooling(x2, W, b, u, mask=mask2, tile_rows=8))
    ref2 = _reference(x2, W, b, u, mask=mask2)
    assert jnp.allclose(out2, ref2, rtol=1e-4, atol=1e-4), (out2, ref2)

    print("KERNEL_OK")
</pallas_src>

<mosaic_0001>
module attributes {stable_mosaic.version = 11 : i64} {
  func.func @kernel(%arg0: i32, %arg1: i32, %arg2: memref<8x128xf32, #tpu.memory_space<vmem>>, %arg3: memref<128x1xf32, #tpu.memory_space<vmem>>, %arg4: memref<1x1xf32, #tpu.memory_space<smem>>, %arg5: memref<8x1xf32, #tpu.memory_space<vmem>>, %arg6: memref<1x1x128xf32, #tpu.memory_space<vmem>>, %arg7: memref<1x128xf32, #tpu.memory_space<vmem>>) attributes {dimension_semantics = [#tpu.dimension_semantics<parallel>, #tpu.dimension_semantics<arbitrary>], iteration_bounds = array<i64: 1, 1>, scalar_prefetch = 0 : i64, scratch_operands = 1 : i64, tpu.core_type = #tpu.core_type<tc>, window_params = [{transform_indices = @transform_0, window_bounds = array<i64: 8, 128>}, {pipeline_mode = #tpu.pipeline_mode<synchronous>, transform_indices = @transform_1, window_bounds = array<i64: 128, 1>}, {transform_indices = @transform_2, window_bounds = array<i64: 1, 1>}, {transform_indices = @transform_3, window_bounds = array<i64: 8, 1>}, {transform_indices = @transform_4, window_bounds = array<i64: 1, 1, 128>}]} {
    %c0_i32 = arith.constant 0 : i32
    %0 = arith.cmpi eq, %arg1, %c0_i32 : i32
    %1 = arith.extui %0 : i1 to i32
    %c0_i32_0 = arith.constant 0 : i32
    %2 = arith.cmpi ne, %1, %c0_i32_0 : i32
    scf.if %2 {
      %cst_15 = arith.constant 0.000000e+00 : f32
      %21 = vector.broadcast %cst_15 : f32 to vector<1x128xf32>
      %c0_16 = arith.constant 0 : index
      %c0_17 = arith.constant 0 : index
      %22 = vector.load %arg7[%c0_16, %c0_17] : memref<1x128xf32, #tpu.memory_space<vmem>>, vector<1x128xf32>
      tpu.vector_store %arg7[%c0_16, %c0_17], %21 {strides = array<i32>} : memref<1x128xf32, #tpu.memory_space<vmem>>, vector<1x128xf32>,
    } else {
    }
    %c0 = arith.constant 0 : index
    %c0_1 = arith.constant 0 : index
    %3 = vector.load %arg2[%c0, %c0_1] : memref<8x128xf32, #tpu.memory_space<vmem>>, vector<8x128xf32>
    %c0_2 = arith.constant 0 : index
    %c0_3 = arith.constant 0 : index
    %4 = vector.load %arg3[%c0_2, %c0_3] : memref<128x1xf32, #tpu.memory_space<vmem>>, vector<128x1xf32>
    %cst = arith.constant dense<0.000000e+00> : vector<8x1xf32>
    %5 = tpu.matmul %3, %4, %cst {dimension_numbers = #tpu.dot_dimension_numbers<[1], [0], [0], [1], [0, 0, 1, 1], [], []>} : vector<8x128xf32>, vector<128x1xf32>, vector<8x1xf32> -> vector<8x1xf32>
    %c0_4 = arith.constant 0 : index
    %c0_5 = arith.constant 0 : index
    %6 = memref.load %arg4[%c0_4, %c0_5] : memref<1x1xf32, #tpu.memory_space<smem>>
    %7 = vector.broadcast %6 : f32 to vector<8x1xf32>
    %8 = arith.addf %5, %7 : vector<8x1xf32>
    %c0_6 = arith.constant 0 : index
    %c0_7 = arith.constant 0 : index
    %9 = vector.load %arg5[%c0_6, %c0_7] : memref<8x1xf32, #tpu.memory_space<vmem>>, vector<8x1xf32>
    %10 = arith.mulf %8, %9 : vector<8x1xf32>
    %c0_8 = arith.constant 0 : index
    %c0_9 = arith.constant 0 : index
    %11 = vector.load %arg7[%c0_8, %c0_9] : memref<1x128xf32, #tpu.memory_space<vmem>>, vector<1x128xf32>
    %12 = vector.broadcast %10 : vector<8x1xf32> to vector<8x128xf32>
    %13 = arith.mulf %12, %3 : vector<8x128xf32>
    %cst_10 = arith.constant dense<0.000000e+00> : vector<128xf32>
    %14 = vector.multi_reduction <add>, %13, %cst_10 [0] : vector<8x128xf32> to vector<128xf32>
    %15 = vector.shape_cast %14 : vector<128xf32> to vector<1x128xf32>
    %16 = arith.addf %11, %15 : vector<1x128xf32>
    %c0_11 = arith.constant 0 : index
    %c0_12 = arith.constant 0 : index
    %17 = vector.load %arg7[%c0_11, %c0_12] : memref<1x128xf32, #tpu.memory_space<vmem>>, vector<1x128xf32>
    tpu.vector_store %arg7[%c0_11, %c0_12], %16 {strides = array<i32>} : memref<1x128xf32, #tpu.memory_space<vmem>>, vector<1x128xf32>,
    %c0_i32_13 = arith.constant 0 : i32
    %18 = arith.cmpi eq, %arg1, %c0_i32_13 : i32
    %19 = arith.extui %18 : i1 to i32
    %c0_i32_14 = arith.constant 0 : i32
    %20 = arith.cmpi ne, %19, %c0_i32_14 : i32
    scf.if %20 {
      %c0_15 = arith.constant 0 : index
      %c0_16 = arith.constant 0 : index
      %21 = vector.load %arg7[%c0_15, %c0_16] : memref<1x128xf32, #tpu.memory_space<vmem>>, vector<1x128xf32>
      %c0_17 = arith.constant 0 : index
      %c0_18 = arith.constant 0 : index
      %c0_19 = arith.constant 0 : index
      %22 = vector.load %arg6[%c0_17, %c0_18, %c0_19] : memref<1x1x128xf32, #tpu.memory_space<vmem>>, vector<1x1x128xf32>
      %23 = vector.shape_cast %22 : vector<1x1x128xf32> to vector<1x128xf32>
      %24 = vector.shape_cast %21 : vector<1x128xf32> to vector<1x1x128xf32>
      tpu.vector_store %arg6[%c0_17, %c0_18, %c0_19], %24 {strides = array<i32>} : memref<1x1x128xf32, #tpu.memory_space<vmem>>, vector<1x1x128xf32>,
    } else {
    }
    return
  }
  func.func @transform_0(%arg0: i32, %arg1: i32) -> (i32, i32) {
    %c1_i32 = arith.constant 1 : i32
    %0 = arith.muli %arg0, %c1_i32 : i32
    %1 = arith.addi %0, %arg1 : i32
    %c0_i32 = arith.constant 0 : i32
    %c0_i32_0 = arith.constant 0 : i32
    return %1, %c0_i32 : i32, i32
  }
  func.func @transform_1(%arg0: i32, %arg1: i32) -> (i32, i32) {
    %c0_i32 = arith.constant 0 : i32
    %c0_i32_0 = arith.constant 0 : i32
    %c0_i32_1 = arith.constant 0 : i32
    return %c0_i32, %c0_i32_0 : i32, i32
  }
  func.func @transform_2(%arg0: i32, %arg1: i32) -> (i32, i32) {
    %c0_i32 = arith.constant 0 : i32
    %c0_i32_0 = arith.constant 0 : i32
    %c0_i32_1 = arith.constant 0 : i32
    return %c0_i32, %c0_i32_0 : i32, i32
  }
  func.func @transform_3(%arg0: i32, %arg1: i32) -> (i32, i32) {
    %c1_i32 = arith.constant 1 : i32
    %0 = arith.muli %arg0, %c1_i32 : i32
    %1 = arith.addi %0, %arg1 : i32
    %c0_i32 = arith.constant 0 : i32
    %c0_i32_0 = arith.constant 0 : i32
    return %1, %c0_i32 : i32, i32
  }
  func.func @transform_4(%arg0: i32, %arg1: i32) -> (i32, i32, i32) {
    %c0_i32 = arith.constant 0 : i32
    %c0_i32_0 = arith.constant 0 : i32
    %c0_i32_1 = arith.constant 0 : i32
    return %arg0, %c0_i32, %c0_i32_0 : i32, i32, i32
  }
}

</mosaic_0001>

<bundles_post_ra>
// kernel: tpu_custom_call.1
= control target key start
LH: loop header
LB: loop body
LE: loop exit
PB: predicated region body
PF: predicated region fallthrough
CT: control target
= control target key end

     0   :  { %v301_v3 = vmov 0.0|0.0   ;;  %v302_v6 = vmov 0.0   ;;  %vm303_vm0 = vmmov 0   ;;  %s400_s0 = inlined_call_operand.vmem [shape: f32[8,128], index: 0, kind: input, shape index: {}]   ;;  %s401_s1 = inlined_call_operand.vmem [shape: f32[128,1], index: 1, kind: input, shape index: {}]   ;;  %s402_s2 = inlined_call_operand.<no memory space> [shape: f32[1,1], index: 2, kind: input, shape index: {}]   ;;  %s403_s3 = inlined_call_operand.vmem [shape: f32[8,1], index: 3, kind: input, shape index: {}]   ;;  %s404_s4 = inlined_call_operand.hbm [shape: f32[1,1,128], index: 4, kind: output, shape index: {}]  }
   0x1   :  { %v59_v0 = vld [vmem:[%s401_s1] sm:$0xff]  ;;  %v60_v1 = vld [vmem:[%s401_s1 + $0x8] sm:$0xff]  ;;  %v61_v2 = vld [vmem:[%s401_s1 + $0x10] sm:$0xff]  ;;  %247 = vmatprep.subr.bf16.mxu0 %v301_v3  ;;  %57 = vst [vmem:[#allocation2] sm:$0x1] %v302_v6  ;;  %244 = vmatprep.mubr.msk.f32.mxu0 %vm303_vm0, %v302_v6 }
   0x2   :  { %v248_v4 = vpack.c.bf16 %v60_v1, %v59_v0  ;;  %v62_v5 = vld [vmem:[%s401_s1 + $0x18] sm:$0xff]  ;;  %v63_v8 = vld [vmem:[%s401_s1 + $0x20] sm:$0xff]  ;;  %v64_v9 = vld [vmem:[%s401_s1 + $0x28] sm:$0xff] }
   0x3   :  { %v251_v7 = vpack.c.bf16 %v62_v5, %v61_v2 }
   0x4   :  { %249 = vmatpush3.bf16.msra.mxu0 %v248_v4 }
   0x5   :  { %250 = vmatprep.subr.bf16.mxu0 %v301_v3 }
   0x6   :  { %10 = vsyncpa [#allocation5], 0  ;;  %v254_v10 = vpack.c.bf16 %v64_v9, %v63_v8  ;;  %v65_v11 = vld [vmem:[%s401_s1 + $0x30] sm:$0xff]  ;;  %v66_v12 = vld [vmem:[%s401_s1 + $0x38] sm:$0xff]  ;;  %v304_v27 = vmov 0   ;;  %v76_v28 = vstv %s402_s2 }
   0x7   :  { %v257_v13 = vpack.c.bf16 %v66_v12, %v65_v11  ;;  %v67_v14 = vld [vmem:[%s401_s1 + $0x40] sm:$0xff]  ;;  %v68_v15 = vld [vmem:[%s401_s1 + $0x48] sm:$0xff]  ;;  %v69_v17 = vld [vmem:[%s401_s1 + $0x50] sm:$0xff]  ;;  %276 = vset.pattern.permute.xlu0 %v304_v27 }
   0x8   :  { %252 = vmatpush3.bf16.msra.mxu0 %v251_v7  ;;  %v260_v16 = vpack.c.bf16 %v68_v15, %v67_v14  ;;  %v70_v18 = vld [vmem:[%s401_s1 + $0x58] sm:$0xff]  ;;  %v71_v20 = vld [vmem:[%s401_s1 + $0x60] sm:$0xff]  ;;  %v72_v21 = vld [vmem:[%s401_s1 + $0x68] sm:$0xff] }
   0x9   :  { %253 = vmatprep.subr.bf16.mxu0 %v301_v3  ;;  %v263_v19 = vpack.c.bf16 %v70_v18, %v69_v17  ;;  %v266_v22 = vpack.c.bf16 %v72_v21, %v71_v20  ;;  %v73_v23 = vld [vmem:[%s401_s1 + $0x70] sm:$0xff]  ;;  %v74_v24 = vld [vmem:[%s401_s1 + $0x78] sm:$0xff]  ;;  %v58_v26 = vld [vmem:[%s400_s0] sm:$0xff]  ;;  %s305_s0 = smov [#allocation4]  }
   0xa   :  { %v269_v25 = vpack.c.bf16 %v74_v24, %v73_v23  ;;  %v147_v30 = vld [vmem:[%s403_s3] sm:$0xff]  ;;  %s175_s1 = sshll.u32 %s305_s0, 4  ;;  %s176_s1 = int_to_ptr.vmem [resolvable:$true] %s175_s1 }
   0xb   :  { %v149_v41 = vld [vmem:[#allocation2] sm:$0x1]  ;;  %s277_s2 = scalar_lea.vmem %s176_s1, 16  ;;  %s281_s3 = scalar_lea.vmem %s176_s1, 32 }
   0xc   :  { %255 = vmatpush3.bf16.msra.mxu0 %v254_v10  ;;  %p278_p0 = scmp.ne.s32.totalorder %s176_s1, %s277_s2  ;;  %p282_p1 = scmp.lt.s32.totalorder %s176_s1, %s176_s1 }
   0xd   :  { %256 = vmatprep.subr.bf16.mxu0 %v301_v3  ;;  %p283_p2 = scmp.lt.s32.totalorder %s281_s3, %s277_s2 }
   0xf   :  { %p284_p3 = por %p283_p2, %p282_p1 }
  0x10   :  { %258 = vmatpush3.bf16.msra.mxu0 %v257_v13 }
  0x11   :  { %259 = vmatprep.subr.bf16.mxu0 %v301_v3  ;;  %p285_p4 = pnand %p284_p3, %p278_p0 }
  0x14   :  { %261 = vmatpush3.bf16.msra.mxu0 %v260_v16 }
  0x15   :  { %262 = vmatprep.subr.bf16.mxu0 %v301_v3 }
  0x18   :  { %264 = vmatpush3.bf16.msra.mxu0 %v263_v19 }
  0x19   :  { %265 = vmatprep.subr.bf16.mxu0 %v301_v3 }
  0x1c   :  { %267 = vmatpush3.bf16.msra.mxu0 %v266_v22 }
  0x1d   :  { %268 = vmatprep.subr.bf16.mxu0 %v301_v3 }
  0x20   :  { %270 = vmatpush3.bf16.msra.mxu0 %v269_v25 }
  0x23   :  { %245 = vmatmul.mubr.f32.vlgmr.msra.gmra.mrb[0].mxu0 %v58_v26 }
  0xf6   :  { %v143_v29 = vpop.f32.mrb[0].mxu0 }
  0xf7   :  { %v144_v31 = vadd.f32 %v143_v29, %v76_v28  ;;  %v246_v32 = vpop.f32.mrb[1].mxu0 }
  0xf9   :  { %v148_v33 = vmul.f32 %v147_v30, %v144_v31 }
  0xfb   :  { %152 = vperm.xlu0 %276, %v148_v33  }
 0x17a   :  { %v153_v34 = vpop.permute.xlu0 %152 }
 0x17b   :  { %v155_v35 = vmul.f32 %v153_v34, %v58_v26 }
 0x17d   :  { %v156_v36 = vrot.slane %v155_v35, 4 }
 0x17f   :  { %v157_v37 = vadd.f32 %v156_v36, %v155_v35 }
 0x181   :  { %v158_v38 = vrot.slane %v157_v37, 2 }
 0x183   :  { %v159_v39 = vadd.f32 %v158_v38, %v157_v37 }
 0x185   :  { %v160_v40 = vrot.slane %v159_v39, 1 }
 0x187   :  { %v161_v42 = vadd.f32 %v160_v40, %v159_v39 }
 0x189   :  { %v162_v43 = vadd.f32 %v161_v42, %v149_v41 }
 0x18b   :  { %163 = vst [vmem:[#allocation2] sm:$0x1] %v162_v43 }
 0x192   :  { %v167_v44 = vld [vmem:[#allocation2] sm:$0x1] }
 0x193   :  { %168 = vst [vmem:[#allocation4] sm:$0x1] %v167_v44 }
 0x194   :  { %288 = shalt.err (!%p285_p4)
}
 0x195   :  { %s289_s29 = scalar_lea.hbm %s404_s4, 16 }
 0x196   :  { %p290_p5 = scmp.ne.s32.totalorder %s404_s4, %s289_s29  ;;  %p293_p6 = scmp.lt.u32.totalorder %s289_s29, %s404_s4 }
 0x198   :  { %p295_p7 = pnand %p293_p6, %p290_p5 }
 0x19a   :  { %298 = shalt.err (!%p295_p7)
}
 0x19b   :  { %178 = dma.vmem_to_hbm [thread:$0]  %s176_s1, 16, %s404_s4, [#allocation5]  }
 0x19c   :  { %299 = dma.done.wait [#allocation5], 16  }
 0x19d   :  { %300 = vsyncadd [#allocation5], 4294967280 }
 0x19e   :  { %182 = vsyncpa [#allocation5], 1 }

</bundles_post_ra>
